<compile_context>
chip_gen: v6e
topology: v6e:2x2x1
jax: 0.10.0
libtpu: 0.0.40
codegen_flags: <defaults>
</compile_context>

<pallas_src>
import jax
import jax.numpy as jnp
from jax.experimental import pallas as pl
from jax.experimental.pallas import tpu as pltpu


def _frozen_bn_kernel(x_ref, affine_ref, o_ref):
    # x_ref / o_ref: (tm, tn) tiles.  affine_ref: (tm, 2) f32 with
    # column 0 = scale, column 1 = shift.  f32 math keeps exact parity with the
    # PyTorch reference on all chip generations (the op is HBM-bound, so the
    # upcast does not change memory traffic).
    x = x_ref[...].astype(jnp.float32)
    scale = affine_ref[:, 0:1]
    shift = affine_ref[:, 1:2]
    o_ref[...] = (x * scale + shift).astype(o_ref.dtype)


def frozen_batchnorm2d(x, weight, bias, running_mean, running_var, eps=1e-5):
    """FrozenBatchNorm2d forward. x: (N, C, H, W)."""
    N, C, H, W = x.shape
    rows = N * C
    cols = H * W
    itemsize = jnp.dtype(x.dtype).itemsize

    # Fold frozen statistics into a per-channel affine (tiny (C,) op), packed
    # as (rows, 2).  Row r = n*C + c matches the row order of
    # x.reshape(N*C, H*W), so jnp.tile along axis 0 is the correct replication.
    scale = weight.astype(jnp.float32) * jax.lax.rsqrt(
        running_var.astype(jnp.float32) + jnp.float32(eps)
    )
    shift = bias.astype(jnp.float32) - running_mean.astype(jnp.float32) * scale
    affine = jnp.tile(jnp.stack([scale, shift], axis=-1), (N, 1))  # (rows, 2) f32

    x2d = x.reshape(rows, cols)

    # ---- per-generation block / VMEM targets --------------------------------
    try:
        vmem_cap = int(pltpu.get_tpu_info().vmem_capacity_bytes)
    except Exception:
        vmem_cap = 64 * 1024 * 1024          # conservative (v7x-class) fallback
    if vmem_cap >= 96 * 1024 * 1024:         # v5e / v6e: 128 MiB VMEM per core
        target_block_bytes = 8 * 1024 * 1024
        vmem_ceiling = 64 * 1024 * 1024
    else:                                    # v7x: 64 MiB VMEM per core
        target_block_bytes = 2 * 1024 * 1024
        vmem_ceiling = 40 * 1024 * 1024

    # Sublane-packing alignment for the row-block size.
    align = max(8, 32 // itemsize)           # 8 f32, 16 bf16, 32 int8/fp8

    # ---- lane (column) block -------------------------------------------------
    # Full extent when even the minimal row block fits the target; otherwise a
    # multiple-of-128 chunk (handles huge-spatial planes on every generation).
    if cols < 128 or cols * align * itemsize <= target_block_bytes:
        tn = cols
    else:
        tn = max(128, (target_block_bytes // (align * itemsize)) // 128 * 128)

    # ---- row block -----------------------------------------------------------
    tm = max(align, (target_block_bytes // (tn * itemsize)) // align * align)

    def _needed_bytes(tm_, tn_):
        x_blk = tm_ * tn_ * itemsize         # one x (or out) block
        aff_blk = tm_ * 128 * 4              # (tm, 2) f32 lane-pads to 128 lanes
        # 2x double-buffered input + 2x output + 2x affine + slack
        return 4 * x_blk + 2 * aff_blk + (1 << 20)

    # Shrink tm until the double-buffered working set fits the VMEM budget.
    while tm > align and _needed_bytes(tm, tn) * 3 // 2 > vmem_ceiling:
        tm = max(align, (tm // 2) // align * align)

    # If the whole tensor fits in one block, split rows so there are >= 2 grid
    # steps (v7x: feeds both TensorCores; also restores DMA/compute overlap).
    if tm >= rows:
        if rows > align and pl.cdiv(cols, tn) < 2:
            tm = ((rows + 1) // 2 + align - 1) // align * align
        if tm >= rows:
            tm = rows                        # full-extent block is always legal

    grid = (pl.cdiv(rows, tm), pl.cdiv(cols, tn))
    vmem_limit = int(
        min(max(_needed_bytes(tm, tn) * 3 // 2, 16 * 1024 * 1024), vmem_ceiling)
    )

    out2d = pl.pallas_call(
        _frozen_bn_kernel,
        out_shape=jax.ShapeDtypeStruct((rows, cols), x.dtype),
        grid_spec=pltpu.PrefetchScalarGridSpec(
            num_scalar_prefetch=0,
            grid=grid,
            in_specs=[
                pl.BlockSpec((tm, tn), lambda i, j: (i, j)),
                pl.BlockSpec((tm, 2), lambda i, j: (i, 0)),
            ],
            out_specs=pl.BlockSpec((tm, tn), lambda i, j: (i, j)),
        ),
        compiler_params=pltpu.CompilerParams(
            dimension_semantics=("parallel", "parallel"),
            vmem_limit_bytes=vmem_limit,
        ),
    )(x2d, affine)

    return out2d.reshape(N, C, H, W)


if __name__ == "__main__":
    key = jax.random.PRNGKey(0)
    k_x, k_w, k_b, k_m, k_v = jax.random.split(key, 5)

    N, C, H, W = 2, 4, 16, 16
    eps = 1e-5

    x = jax.random.normal(k_x, (N, C, H, W), dtype=jnp.float32)

    # Module __init__ defaults (identity transform) perturbed deterministically
    # so the kernel exercises non-trivial per-channel statistics.
    weight = jnp.ones((C,), jnp.float32) + 0.1 * jax.random.normal(k_w, (C,))
    bias = jnp.zeros((C,), jnp.float32) + 0.1 * jax.random.normal(k_b, (C,))
    running_mean = jnp.zeros((C,), jnp.float32) + 0.1 * jax.random.normal(k_m, (C,))
    running_var = (jnp.ones((C,), jnp.float32) - eps) + 0.05 * jnp.abs(
        jax.random.normal(k_v, (C,))
    )

    out = frozen_batchnorm2d(x, weight, bias, running_mean, running_var, eps=eps)
    out = jax.block_until_ready(out)

    # Reference (pure JAX), matches F.batch_norm(training=False).
    ref_scale = weight * jax.lax.rsqrt(running_var + eps)
    ref_shift = bias - running_mean * ref_scale
    ref = x * ref_scale.reshape(1, C, 1, 1) + ref_shift.reshape(1, C, 1, 1)

    assert out.shape == x.shape and out.dtype == x.dtype
    assert jnp.allclose(out, ref, atol=1e-5, rtol=1e-5)

    print("KERNEL_OK")
</pallas_src>

<mosaic_0001>
module attributes {stable_mosaic.version = 11 : i64} {
  func.func @_frozen_bn_kernel(%arg0: i32, %arg1: i32, %arg2: memref<8x256xf32, #tpu.memory_space<vmem>>, %arg3: memref<8x2xf32, #tpu.memory_space<vmem>>, %arg4: memref<8x256xf32, #tpu.memory_space<vmem>>) attributes {dimension_semantics = [#tpu.dimension_semantics<parallel>, #tpu.dimension_semantics<parallel>], iteration_bounds = array<i64: 1, 1>, scalar_prefetch = 0 : i64, scratch_operands = 0 : i64, tpu.core_type = #tpu.core_type<tc>, window_params = [{transform_indices = @transform_0, window_bounds = array<i64: 8, 256>}, {transform_indices = @transform_1, window_bounds = array<i64: 8, 2>}, {transform_indices = @transform_2, window_bounds = array<i64: 8, 256>}]} {
    %c0 = arith.constant 0 : index
    %c0_0 = arith.constant 0 : index
    %0 = vector.load %arg2[%c0, %c0_0] : memref<8x256xf32, #tpu.memory_space<vmem>>, vector<8x256xf32>
    %c0_1 = arith.constant 0 : index
    %c0_2 = arith.constant 0 : index
    %1 = vector.load %arg3[%c0_1, %c0_2] : memref<8x2xf32, #tpu.memory_space<vmem>>, vector<8x1xf32>
    %c0_3 = arith.constant 0 : index
    %c1 = arith.constant 1 : index
    %2 = vector.load %arg3[%c0_3, %c1] : memref<8x2xf32, #tpu.memory_space<vmem>>, vector<8x1xf32>
    %3 = vector.broadcast %1 : vector<8x1xf32> to vector<8x256xf32>
    %4 = arith.mulf %0, %3 : vector<8x256xf32>
    %5 = vector.broadcast %2 : vector<8x1xf32> to vector<8x256xf32>
    %6 = arith.addf %4, %5 : vector<8x256xf32>
    %c0_4 = arith.constant 0 : index
    %c0_5 = arith.constant 0 : index
    %7 = vector.load %arg4[%c0_4, %c0_5] : memref<8x256xf32, #tpu.memory_space<vmem>>, vector<8x256xf32>
    tpu.vector_store %arg4[%c0_4, %c0_5], %6 {strides = array<i32>} : memref<8x256xf32, #tpu.memory_space<vmem>>, vector<8x256xf32>,
    return
  }
  func.func @transform_0(%arg0: i32, %arg1: i32) -> (i32, i32) {
    %c0_i32 = arith.constant 0 : i32
    return %arg0, %arg1 : i32, i32
  }
  func.func @transform_1(%arg0: i32, %arg1: i32) -> (i32, i32) {
    %c0_i32 = arith.constant 0 : i32
    %c0_i32_0 = arith.constant 0 : i32
    return %arg0, %c0_i32 : i32, i32
  }
  func.func @transform_2(%arg0: i32, %arg1: i32) -> (i32, i32) {
    %c0_i32 = arith.constant 0 : i32
    return %arg0, %arg1 : i32, i32
  }
}

</mosaic_0001>

<bundles_post_ra>
// kernel: tpu_custom_call.1
= control target key start
LH: loop header
LB: loop body
LE: loop exit
PB: predicated region body
PF: predicated region fallthrough
CT: control target
= control target key end

     0   :  { %7 = vsyncpa [#allocation3], 0  ;;  %s135_s0 = inlined_call_operand.hbm [shape: f32[8,256], index: 0, kind: input, shape index: {}]   ;;  %s136_s1 = inlined_call_operand.vmem [shape: f32[8,2], index: 1, kind: input, shape index: {}]   ;;  %s137_s2 = inlined_call_operand.hbm [shape: f32[8,256], index: 2, kind: output, shape index: {}]  }
   0x1   :  { %8 = vsyncpa [#allocation4], 0  ;;  %s107_s9 = smov [#allocation2]  }
   0x2   :  { %s15_s10 = sshll.u32 %s107_s9, 4  ;;  %s16_s10 = int_to_ptr.vmem [resolvable:$true] %s15_s10 }
   0x3   :  { %s71_s11 = scalar_lea.vmem %s16_s10, 256  ;;  %p76_p1 = scmp.lt.s32.totalorder %s16_s10, %s16_s10 }
   0x4   :  { %p72_p0 = scmp.ne.s32.totalorder %s16_s10, %s71_s11  ;;  %p77_p2 = scmp.lt.s32.totalorder %s71_s11, %s71_s11 }
   0x6   :  { %p78_p3 = por %p77_p2, %p76_p1 }
   0x8   :  { %p79_p4 = pnand %p78_p3, %p72_p0 }
   0xa   :  { %82 = shalt.err (!%p79_p4)
}
   0xb   :  { %18 = dma.hbm_to_vmem [thread:$0]  %s135_s0, 256, %s16_s10, [#allocation3]  }
   0xc   :  { %103 = dma.done.wait [#allocation3], 256  }
   0xd   :  { %104 = vsyncadd [#allocation3], 4294967040  ;;  %v108_v0 = vmov 0   ;;  %v26_v1 = vld [vmem:[%s136_s1] sm:$0xff]  ;;  %v109_v2 = vmov 1   ;;  %v25_v5 = vld [vmem:[#allocation2 + $0x8] sm:$0xff] }
   0xe   :  { %61 = vset.pattern.permute.xlu0 %v108_v0  ;;  %v24_v4 = vld [vmem:[#allocation2] sm:$0xff]  ;;  %s110_s16 = smov [#allocation5]  }
   0xf   :  { %29 = vperm.xlu0 %61, %v26_v1   ;;  %s48_s17 = sshll.u32 %s110_s16, 4  ;;  %s49_s17 = int_to_ptr.vmem [resolvable:$true] %s48_s17 }
  0x10   :  { %s83_s0 = scalar_lea.vmem %s49_s17, 256  ;;  %p88_p6 = scmp.lt.s32.totalorder %s49_s17, %s49_s17 }
  0x11   :  { %p84_p5 = scmp.ne.s32.totalorder %s49_s17, %s83_s0  ;;  %p89_p7 = scmp.lt.s32.totalorder %s83_s0, %s83_s0 }
  0x13   :  { %62 = vset.pattern.permute.xlu0 %v109_v2  ;;  %p90_p8 = por %p89_p7, %p88_p6 }
  0x14   :  { %35 = vperm.xlu0 %62, %v26_v1  }
  0x15   :  { %p91_p9 = pnand %p90_p8, %p84_p5 }
  0x8a   :  { %v30_v3 = vpop.permute.xlu0 %29 }
  0x8b   :  { %v32_v6 = vmul.f32 %v30_v3, %v24_v4  ;;  %v33_v7 = vmul.f32 %v30_v3, %v25_v5 }
  0x8f   :  { %v36_v8 = vpop.permute.xlu0 %35 }
  0x90   :  { %v38_v9 = vadd.f32 %v36_v8, %v32_v6  ;;  %v39_v10 = vadd.f32 %v36_v8, %v33_v7 }
  0x92   :  { %40 = vst [vmem:[#allocation5] sm:$0xff] %v38_v9  ;;  %41 = vst [vmem:[#allocation5 + $0x8] sm:$0xff] %v39_v10 }
  0x93   :  { %94 = shalt.err (!%p91_p9)
}
  0x94   :  { %51 = dma.vmem_to_hbm [thread:$0]  %s49_s17, 256, %s137_s2, [#allocation4]  }
  0x95   :  { %105 = dma.done.wait [#allocation4], 256  }
  0x96   :  { %106 = vsyncadd [#allocation4], 4294967040 }
  0x97   :  { %55 = vsyncpa [#allocation3], 1 }
  0x98   :  { %56 = vsyncpa [#allocation4], 1 }

</bundles_post_ra>
